<compile_context>
chip_gen: v7x
topology: tpu7x:2x2x1
jax: 0.10.0
libtpu: 0.0.40
codegen_flags: <defaults>
</compile_context>

<pallas_src>
import functools

import jax
import jax.numpy as jnp
from jax import lax
from jax.experimental import pallas as pl
from jax.experimental.pallas import tpu as pltpu


_SQRT_2_OVER_PI = 0.7978845608028654


def _gelu(x):
    # tanh-approximation GELU: polynomial on the VPU, tanh on the (free) EUP slot.
    # TODO(synk): if the original steps use exact (erf) nn.GELU, swap this for
    # jax.nn.gelu(x, approximate=False) — differences are at the ~1e-3 level.
    x2 = x * x
    inner = x + jnp.float32(0.044715) * (x2 * x)
    return jnp.float32(0.5) * x * (1.0 + jnp.tanh(jnp.float32(_SQRT_2_OVER_PI) * inner))


# --------------------------------------------------------------------------
# Path A: all weights resident in VMEM, one invocation per B tile.
# --------------------------------------------------------------------------
def _resident_kernel(x_ref, w_ref, b_ref, o_ref, acc_ref, *, num_steps):
    """
    x_ref:   (TB, H)     input tile
    w_ref:   (S, H, H)   bf16 weight stack (fully resident, constant index map)
    b_ref:   (S, H)      f32 bias stack (fully resident)
    o_ref:   (TB, H)     output tile
    acc_ref: (TB, H)     f32 VMEM scratch carrying x across steps
    """
    acc_ref[...] = x_ref[...].astype(jnp.float32)

    def body(s, carry):
        y = jnp.dot(acc_ref[...].astype(jnp.bfloat16), w_ref[s],
                    preferred_element_type=jnp.float32)
        # (1, H) bias row broadcasts over the TB rows in the add.
        acc_ref[...] = _gelu(y + b_ref[pl.ds(s, 1), :])
        return carry

    lax.fori_loop(0, num_steps, body, 0, unroll=True)
    o_ref[...] = acc_ref[...].astype(o_ref.dtype)


# --------------------------------------------------------------------------
# Path B: stream bf16 weight column-blocks; ping-pong f32 activation carry.
# Grid: (num_b_tiles, S, num_tiles) with ("parallel", "arbitrary", "arbitrary").
# --------------------------------------------------------------------------
def _streaming_kernel(x_ref, w_ref, b_ref, o_ref, acc_ref, *, num_tiles, tn):
    """
    x_ref:   (TB, H)             input tile (re-fetched only when the B tile changes)
    w_ref:   (1, H, TN)          W[s][:, n*TN:(n+1)*TN] in bf16 (auto-pipelined DMA)
    b_ref:   (S*num_tiles, TN)   resident bias stack; row (s*num_tiles + n)
    o_ref:   (TB, TN)            output tile (b, n); the s == S-1 write is final
    acc_ref: (2*num_tiles, TB, TN)  f32 ping-pong activation carry (two H-slabs)
    """
    s = pl.program_id(1)
    n = pl.program_id(2)
    parity = lax.rem(s, 2)
    read_base = parity * num_tiles          # slab holding step s-1 activations (or x)
    write_base = (1 - parity) * num_tiles   # slab receiving step s activations

    @pl.when(jnp.logical_and(s == 0, n == 0))
    def _():
        # Split x into K tiles of slab 0 (static unroll -> static lane slices).
        for k in range(num_tiles):
            acc_ref[k] = x_ref[:, k * tn:(k + 1) * tn].astype(jnp.float32)

    # y = x_prev @ W[s][:, n-tile], decomposed over the K tiles of the carry.
    y = jnp.dot(acc_ref[read_base].astype(jnp.bfloat16), w_ref[0, 0:tn, :],
                preferred_element_type=jnp.float32)
    for k in range(1, num_tiles):
        y = y + jnp.dot(acc_ref[read_base + k].astype(jnp.bfloat16),
                        w_ref[0, k * tn:(k + 1) * tn, :],
                        preferred_element_type=jnp.float32)

    bias = b_ref[pl.ds(s * num_tiles + n, 1), :]      # (1, TN), broadcasts over rows
    y = _gelu(y + bias)

    acc_ref[write_base + n] = y
    # The (b, n) output block is revisited each step; only the last step's value
    # survives in HBM.  Intermediate flushes cost (S-1)*B*H writes — small next
    # to the streamed weight traffic in the regime where this path is taken.
    o_ref[...] = y.astype(o_ref.dtype)


# --------------------------------------------------------------------------
# Wrapper
# --------------------------------------------------------------------------
def _vmem_capacity_bytes():
    try:
        cap = getattr(pltpu.get_tpu_info(), "vmem_capacity_bytes", None)
        if cap:
            return int(cap)
    except Exception:
        pass
    return 64 << 20  # conservative fallback (v7x per-TensorCore VMEM)


def prepare_arbitrary_iterations_params(weights, biases):
    """One-time parameter prep (call at load time, NOT per forward pass):
    bf16 weights for MXU / HBM streaming, f32 biases for the epilogue."""
    return weights.astype(jnp.bfloat16), biases.astype(jnp.float32)


def arbitrary_iterations(x, weights, biases, *,
                         resident_weight_limit_bytes=None,
                         max_tb=256, max_tn=None):
    """Apply S sequential Linear+GELU steps to x inside a single Pallas kernel.

    x:       [B, H]
    weights: [S, H, H]  (pass bf16 from prepare_arbitrary_iterations_params to
                         avoid a per-call cast + extra HBM round trip)
    biases:  [S, H]     (f32)
    """
    B, H = x.shape
    S = weights.shape[0]
    assert weights.shape == (S, H, H) and biases.shape == (S, H)

    # Hot callers should pass pre-converted params; these are no-ops then.
    w_bf16 = weights if weights.dtype == jnp.bfloat16 else weights.astype(jnp.bfloat16)
    b_f32 = biases if biases.dtype == jnp.float32 else biases.astype(jnp.float32)

    x_bytes = x.dtype.itemsize
    out_bytes = x_bytes
    capacity = _vmem_capacity_bytes()
    budget = capacity - (8 << 20)          # headroom below the physical cap

    if resident_weight_limit_bytes is None:
        resident_weight_limit_bytes = min(capacity // 3, 48 << 20)

    tb = max(1, min(B, max_tb))
    num_b_tiles = pl.cdiv(B, tb)

    w_bytes = S * H * H * 2                # bf16
    bias_bytes = S * H * 4                 # f32

    def _limit(est):
        return int(min(capacity - (4 << 20),
                       max(est + max(est // 4, 8 << 20), 32 << 20)))

    # ---- Path A: everything resident, fori_loop over steps, B tiles in the grid. ----
    # Budget 2x for the resident W block (constant index map may still be
    # double-buffered).  TODO(synk): pipeline_mode=pl.Buffered(1) on the W/b
    # specs would halve that footprint.
    est_a = (2 * w_bytes + 2 * bias_bytes
             + 2 * tb * H * x_bytes + 2 * tb * H * out_bytes + tb * H * 4)
    if w_bytes <= resident_weight_limit_bytes and est_a <= budget:
        kernel = functools.partial(_resident_kernel, num_steps=S)
        return pl.pallas_call(
            kernel,
            out_shape=jax.ShapeDtypeStruct((B, H), x.dtype),
            grid_spec=pltpu.PrefetchScalarGridSpec(
                num_scalar_prefetch=0,
                grid=(num_b_tiles,),
                in_specs=[
                    pl.BlockSpec((tb, H), lambda i: (i, 0)),        # x tile
                    pl.BlockSpec((S, H, H), lambda i: (0, 0, 0)),   # all W (bf16)
                    pl.BlockSpec((S, H), lambda i: (0, 0)),         # all b (f32)
                ],
                out_specs=pl.BlockSpec((tb, H), lambda i: (i, 0)),
                scratch_shapes=[pltpu.VMEM((tb, H), jnp.float32)],
            ),
            compiler_params=pltpu.CompilerParams(
                dimension_semantics=("parallel",),
                vmem_limit_bytes=_limit(est_a),
            ),
        )(x, w_bf16, b_f32)

    # ---- Path B: stream W column-blocks; tile N only when full-H blocks don't fit. ----
    def est_b(tn_):
        return (2 * H * tn_ * 2              # double-buffered bf16 W block
                + 2 * tb * H * x_bytes       # x block
                + 2 * tb * tn_ * out_bytes   # out block
                + 2 * bias_bytes             # resident bias stack (2x for safety)
                + 2 * tb * H * 4)            # ping-pong f32 activation carry

    tn = H
    if max_tn is not None:
        while tn > max_tn and tn % 256 == 0:
            tn //= 2
    while est_b(tn) > budget and tn % 256 == 0 and tn > 128:
        tn //= 2
    num_tiles = H // tn
    assert tn * num_tiles == H
    # TODO(synk): for extreme H where even the 2*TB*H*4 carry exceeds VMEM,
    # additionally tile the carry along H (K-grid axis with partial-sum scratch).
    # TODO(synk): sweep pipeline_mode=pl.Buffered(3) on the W spec once N-tiled.

    b_rows = b_f32.reshape(S * num_tiles, tn)
    kernel = functools.partial(_streaming_kernel, num_tiles=num_tiles, tn=tn)

    return pl.pallas_call(
        kernel,
        out_shape=jax.ShapeDtypeStruct((B, H), x.dtype),
        grid_spec=pltpu.PrefetchScalarGridSpec(
            num_scalar_prefetch=0,
            grid=(num_b_tiles, S, num_tiles),
            in_specs=[
                pl.BlockSpec((tb, H), lambda b, s, n: (b, 0)),          # x tile
                pl.BlockSpec((1, H, tn), lambda b, s, n: (s, 0, n)),    # W[s] col-block
                pl.BlockSpec((S * num_tiles, tn), lambda b, s, n: (0, 0)),  # biases
            ],
            out_specs=pl.BlockSpec((tb, tn), lambda b, s, n: (b, n)),
            scratch_shapes=[pltpu.VMEM((2 * num_tiles, tb, tn), jnp.float32)],
        ),
        compiler_params=pltpu.CompilerParams(
            dimension_semantics=("parallel", "arbitrary", "arbitrary"),
            vmem_limit_bytes=_limit(est_b(tn)),
        ),
    )(x, w_bf16, b_rows)


def _reference(x, weights, biases):
    """Pure-JAX reference using the SAME bf16 weight quantization as the kernel."""
    w = weights.astype(jnp.bfloat16)
    b = biases.astype(jnp.float32)
    y = x.astype(jnp.float32)
    for s in range(weights.shape[0]):
        y = jnp.dot(y.astype(jnp.bfloat16), w[s],
                    preferred_element_type=jnp.float32) + b[s]
        y = _gelu(y)
    return y.astype(x.dtype)


if __name__ == "__main__":
    def make_case(key, B, H, S):
        kx, kw, kb = jax.random.split(key, 3)
        x = jax.random.normal(kx, (B, H), dtype=jnp.float32)
        w = jax.random.normal(kw, (S, H, H), dtype=jnp.float32) * (1.0 / jnp.sqrt(H))
        b = jax.random.normal(kb, (S, H), dtype=jnp.float32) * 0.01
        return x, w, b

    k1, k2 = jax.random.split(jax.random.PRNGKey(0))

    # Case 1: small shapes -> resident path (single invocation, weights in VMEM).
    x, w, b = make_case(k1, B=8, H=128, S=3)
    wq, bq = prepare_arbitrary_iterations_params(w, b)   # one-time prep, no per-call cast
    out = jax.block_until_ready(arbitrary_iterations(x, wq, bq))
    ref = _reference(x, w, b)
    assert out.shape == (8, 128)
    assert jnp.allclose(out, ref, atol=2e-2, rtol=2e-2), "resident path mismatch"

    # Case 2: same shapes, forced onto the streaming path (single N tile).
    out2 = jax.block_until_ready(
        arbitrary_iterations(x, wq, bq, resident_weight_limit_bytes=0))
    assert jnp.allclose(out2, ref, atol=2e-2, rtol=2e-2), "streaming path mismatch"

    # Case 3: forced streaming with B tiling (2 x TB=8) and N tiling (2 x TN=128).
    x3, w3, b3 = make_case(k2, B=16, H=256, S=2)
    wq3, bq3 = prepare_arbitrary_iterations_params(w3, b3)
    out3 = jax.block_until_ready(
        arbitrary_iterations(x3, wq3, bq3, resident_weight_limit_bytes=0,
                             max_tb=8, max_tn=128))
    ref3 = _reference(x3, w3, b3)
    assert out3.shape == (16, 256)
    assert jnp.allclose(out3, ref3, atol=2e-2, rtol=2e-2), "tiled streaming mismatch"

    # TODO(synk): clear_kv_cache() is a no-op — the synthetic steps carry no KV state.
    print("KERNEL_OK")
</pallas_src>

<mosaic_0001>
module attributes {stable_mosaic.version = 11 : i64} {
  func.func @_resident_kernel(%arg0: i32, %arg1: memref<8x128xf32, #tpu.memory_space<vmem>>, %arg2: memref<3x128x128xbf16, #tpu.memory_space<vmem>>, %arg3: memref<3x128xf32, #tpu.memory_space<vmem>>, %arg4: memref<8x128xf32, #tpu.memory_space<vmem>>, %arg5: memref<8x128xf32, #tpu.memory_space<vmem>>) attributes {dimension_semantics = [#tpu.dimension_semantics<parallel>], iteration_bounds = array<i64: 1>, scalar_prefetch = 0 : i64, scratch_operands = 1 : i64, tpu.core_type = #tpu.core_type<tc>, window_params = [{transform_indices = @transform_0, window_bounds = array<i64: 8, 128>}, {pipeline_mode = #tpu.pipeline_mode<synchronous>, transform_indices = @transform_1, window_bounds = array<i64: 3, 128, 128>}, {pipeline_mode = #tpu.pipeline_mode<synchronous>, transform_indices = @transform_2, window_bounds = array<i64: 3, 128>}, {transform_indices = @transform_3, window_bounds = array<i64: 8, 128>}]} {
    %c0 = arith.constant 0 : index
    %c0_0 = arith.constant 0 : index
    %0 = vector.load %arg1[%c0, %c0_0] : memref<8x128xf32, #tpu.memory_space<vmem>>, vector<8x128xf32>
    %c0_1 = arith.constant 0 : index
    %c0_2 = arith.constant 0 : index
    %1 = vector.load %arg5[%c0_1, %c0_2] : memref<8x128xf32, #tpu.memory_space<vmem>>, vector<8x128xf32>
    tpu.vector_store %arg5[%c0_1, %c0_2], %0 {strides = array<i32>} : memref<8x128xf32, #tpu.memory_space<vmem>>, vector<8x128xf32>,
    %c0_i32 = arith.constant 0 : i32
    %c0_3 = arith.constant 0 : index
    %c0_4 = arith.constant 0 : index
    %2 = vector.load %arg5[%c0_3, %c0_4] : memref<8x128xf32, #tpu.memory_space<vmem>>, vector<8x128xf32>
    %3 = arith.truncf %2 : vector<8x128xf32> to vector<8x128xbf16>
    %4 = arith.index_cast %c0_i32 : i32 to index
    %c0_5 = arith.constant 0 : index
    %c0_6 = arith.constant 0 : index
    %5 = vector.load %arg2[%4, %c0_5, %c0_6] : memref<3x128x128xbf16, #tpu.memory_space<vmem>>, vector<1x128x128xbf16>
    %6 = vector.shape_cast %5 : vector<1x128x128xbf16> to vector<128x128xbf16>
    %cst = arith.constant dense<0.000000e+00> : vector<8x128xf32>
    %7 = tpu.matmul %3, %6, %cst {dimension_numbers = #tpu.dot_dimension_numbers<[1], [0], [0], [1], [0, 0, 1, 1], [], []>} : vector<8x128xbf16>, vector<128x128xbf16>, vector<8x128xf32> -> vector<8x128xf32>
    %8 = arith.index_cast %c0_i32 : i32 to index
    %c0_7 = arith.constant 0 : index
    %9 = vector.load %arg3[%8, %c0_7] : memref<3x128xf32, #tpu.memory_space<vmem>>, vector<1x128xf32>
    %10 = vector.broadcast %9 : vector<1x128xf32> to vector<8x128xf32>
    %11 = arith.addf %7, %10 : vector<8x128xf32>
    %12 = arith.mulf %11, %11 : vector<8x128xf32>
    %13 = arith.mulf %12, %11 : vector<8x128xf32>
    %cst_8 = arith.constant 4.471500e-02 : f32
    %14 = vector.broadcast %cst_8 : f32 to vector<8x128xf32>
    %15 = arith.mulf %14, %13 : vector<8x128xf32>
    %16 = arith.addf %11, %15 : vector<8x128xf32>
    %cst_9 = arith.constant 5.000000e-01 : f32
    %17 = vector.broadcast %cst_9 : f32 to vector<8x128xf32>
    %18 = arith.mulf %17, %11 : vector<8x128xf32>
    %cst_10 = arith.constant 0.797884583 : f32
    %19 = vector.broadcast %cst_10 : f32 to vector<8x128xf32>
    %20 = arith.mulf %19, %16 : vector<8x128xf32>
    %21 = math.tanh %20 : vector<8x128xf32>
    %cst_11 = arith.constant 1.000000e+00 : f32
    %22 = vector.broadcast %cst_11 : f32 to vector<8x128xf32>
    %23 = arith.addf %22, %21 : vector<8x128xf32>
    %24 = arith.mulf %18, %23 : vector<8x128xf32>
    %c0_12 = arith.constant 0 : index
    %c0_13 = arith.constant 0 : index
    %25 = vector.load %arg5[%c0_12, %c0_13] : memref<8x128xf32, #tpu.memory_space<vmem>>, vector<8x128xf32>
    tpu.vector_store %arg5[%c0_12, %c0_13], %24 {strides = array<i32>} : memref<8x128xf32, #tpu.memory_space<vmem>>, vector<8x128xf32>,
    %c1_i32 = arith.constant 1 : i32
    %c0_14 = arith.constant 0 : index
    %c0_15 = arith.constant 0 : index
    %26 = vector.load %arg5[%c0_14, %c0_15] : memref<8x128xf32, #tpu.memory_space<vmem>>, vector<8x128xf32>
    %27 = arith.truncf %26 : vector<8x128xf32> to vector<8x128xbf16>
    %28 = arith.index_cast %c1_i32 : i32 to index
    %c0_16 = arith.constant 0 : index
    %c0_17 = arith.constant 0 : index
    %29 = vector.load %arg2[%28, %c0_16, %c0_17] : memref<3x128x128xbf16, #tpu.memory_space<vmem>>, vector<1x128x128xbf16>
    %30 = vector.shape_cast %29 : vector<1x128x128xbf16> to vector<128x128xbf16>
    %cst_18 = arith.constant dense<0.000000e+00> : vector<8x128xf32>
    %31 = tpu.matmul %27, %30, %cst_18 {dimension_numbers = #tpu.dot_dimension_numbers<[1], [0], [0], [1], [0, 0, 1, 1], [], []>} : vector<8x128xbf16>, vector<128x128xbf16>, vector<8x128xf32> -> vector<8x128xf32>
    %32 = arith.index_cast %c1_i32 : i32 to index
    %c0_19 = arith.constant 0 : index
    %33 = vector.load %arg3[%32, %c0_19] : memref<3x128xf32, #tpu.memory_space<vmem>>, vector<1x128xf32>
    %34 = vector.broadcast %33 : vector<1x128xf32> to vector<8x128xf32>
    %35 = arith.addf %31, %34 : vector<8x128xf32>
    %36 = arith.mulf %35, %35 : vector<8x128xf32>
    %37 = arith.mulf %36, %35 : vector<8x128xf32>
    %cst_20 = arith.constant 4.471500e-02 : f32
    %38 = vector.broadcast %cst_20 : f32 to vector<8x128xf32>
    %39 = arith.mulf %38, %37 : vector<8x128xf32>
    %40 = arith.addf %35, %39 : vector<8x128xf32>
    %cst_21 = arith.constant 5.000000e-01 : f32
    %41 = vector.broadcast %cst_21 : f32 to vector<8x128xf32>
    %42 = arith.mulf %41, %35 : vector<8x128xf32>
    %cst_22 = arith.constant 0.797884583 : f32
    %43 = vector.broadcast %cst_22 : f32 to vector<8x128xf32>
    %44 = arith.mulf %43, %40 : vector<8x128xf32>
    %45 = math.tanh %44 : vector<8x128xf32>
    %cst_23 = arith.constant 1.000000e+00 : f32
    %46 = vector.broadcast %cst_23 : f32 to vector<8x128xf32>
    %47 = arith.addf %46, %45 : vector<8x128xf32>
    %48 = arith.mulf %42, %47 : vector<8x128xf32>
    %c0_24 = arith.constant 0 : index
    %c0_25 = arith.constant 0 : index
    %49 = vector.load %arg5[%c0_24, %c0_25] : memref<8x128xf32, #tpu.memory_space<vmem>>, vector<8x128xf32>
    tpu.vector_store %arg5[%c0_24, %c0_25], %48 {strides = array<i32>} : memref<8x128xf32, #tpu.memory_space<vmem>>, vector<8x128xf32>,
    %c2_i32 = arith.constant 2 : i32
    %c0_26 = arith.constant 0 : index
    %c0_27 = arith.constant 0 : index
    %50 = vector.load %arg5[%c0_26, %c0_27] : memref<8x128xf32, #tpu.memory_space<vmem>>, vector<8x128xf32>
    %51 = arith.truncf %50 : vector<8x128xf32> to vector<8x128xbf16>
    %52 = arith.index_cast %c2_i32 : i32 to index
    %c0_28 = arith.constant 0 : index
    %c0_29 = arith.constant 0 : index
    %53 = vector.load %arg2[%52, %c0_28, %c0_29] : memref<3x128x128xbf16, #tpu.memory_space<vmem>>, vector<1x128x128xbf16>
    %54 = vector.shape_cast %53 : vector<1x128x128xbf16> to vector<128x128xbf16>
    %cst_30 = arith.constant dense<0.000000e+00> : vector<8x128xf32>
    %55 = tpu.matmul %51, %54, %cst_30 {dimension_numbers = #tpu.dot_dimension_numbers<[1], [0], [0], [1], [0, 0, 1, 1], [], []>} : vector<8x128xbf16>, vector<128x128xbf16>, vector<8x128xf32> -> vector<8x128xf32>
    %56 = arith.index_cast %c2_i32 : i32 to index
    %c0_31 = arith.constant 0 : index
    %57 = vector.load %arg3[%56, %c0_31] : memref<3x128xf32, #tpu.memory_space<vmem>>, vector<1x128xf32>
    %58 = vector.broadcast %57 : vector<1x128xf32> to vector<8x128xf32>
    %59 = arith.addf %55, %58 : vector<8x128xf32>
    %60 = arith.mulf %59, %59 : vector<8x128xf32>
    %61 = arith.mulf %60, %59 : vector<8x128xf32>
    %cst_32 = arith.constant 4.471500e-02 : f32
    %62 = vector.broadcast %cst_32 : f32 to vector<8x128xf32>
    %63 = arith.mulf %62, %61 : vector<8x128xf32>
    %64 = arith.addf %59, %63 : vector<8x128xf32>
    %cst_33 = arith.constant 5.000000e-01 : f32
    %65 = vector.broadcast %cst_33 : f32 to vector<8x128xf32>
    %66 = arith.mulf %65, %59 : vector<8x128xf32>
    %cst_34 = arith.constant 0.797884583 : f32
    %67 = vector.broadcast %cst_34 : f32 to vector<8x128xf32>
    %68 = arith.mulf %67, %64 : vector<8x128xf32>
    %69 = math.tanh %68 : vector<8x128xf32>
    %cst_35 = arith.constant 1.000000e+00 : f32
    %70 = vector.broadcast %cst_35 : f32 to vector<8x128xf32>
    %71 = arith.addf %70, %69 : vector<8x128xf32>
    %72 = arith.mulf %66, %71 : vector<8x128xf32>
    %c0_36 = arith.constant 0 : index
    %c0_37 = arith.constant 0 : index
    %73 = vector.load %arg5[%c0_36, %c0_37] : memref<8x128xf32, #tpu.memory_space<vmem>>, vector<8x128xf32>
    tpu.vector_store %arg5[%c0_36, %c0_37], %72 {strides = array<i32>} : memref<8x128xf32, #tpu.memory_space<vmem>>, vector<8x128xf32>,
    %c3_i32 = arith.constant 3 : i32
    %c0_38 = arith.constant 0 : index
    %c0_39 = arith.constant 0 : index
    %74 = vector.load %arg5[%c0_38, %c0_39] : memref<8x128xf32, #tpu.memory_space<vmem>>, vector<8x128xf32>
    %c0_40 = arith.constant 0 : index
    %c0_41 = arith.constant 0 : index
    %75 = vector.load %arg4[%c0_40, %c0_41] : memref<8x128xf32, #tpu.memory_space<vmem>>, vector<8x128xf32>
    tpu.vector_store %arg4[%c0_40, %c0_41], %74 {strides = array<i32>} : memref<8x128xf32, #tpu.memory_space<vmem>>, vector<8x128xf32>,
    return
  }
  func.func @transform_0(%arg0: i32) -> (i32, i32) {
    %c0_i32 = arith.constant 0 : i32
    %c0_i32_0 = arith.constant 0 : i32
    return %arg0, %c0_i32 : i32, i32
  }
  func.func @transform_1(%arg0: i32) -> (i32, i32, i32) {
    %c0_i32 = arith.constant 0 : i32
    %c0_i32_0 = arith.constant 0 : i32
    %c0_i32_1 = arith.constant 0 : i32
    %c0_i32_2 = arith.constant 0 : i32
    return %c0_i32, %c0_i32_0, %c0_i32_1 : i32, i32, i32
  }
  func.func @transform_2(%arg0: i32) -> (i32, i32) {
    %c0_i32 = arith.constant 0 : i32
    %c0_i32_0 = arith.constant 0 : i32
    %c0_i32_1 = arith.constant 0 : i32
    return %c0_i32, %c0_i32_0 : i32, i32
  }
  func.func @transform_3(%arg0: i32) -> (i32, i32) {
    %c0_i32 = arith.constant 0 : i32
    %c0_i32_0 = arith.constant 0 : i32
    return %arg0, %c0_i32 : i32, i32
  }
}

</mosaic_0001>

<bundles_post_ra>
// kernel: tpu_custom_call.1
= control target key start
LH: loop header
LB: loop body
LE: loop exit
PB: predicated region body
PF: predicated region fallthrough
CT: control target
= control target key end

     0   :  { %8 = vsyncpa [#allocation4], 0  ;;  %s759_s0 = inlined_call_operand.hbm [shape: f32[8,128], index: 0, kind: input, shape index: {}]   ;;  %s760_s1 = inlined_call_operand.hbm [shape: bf16[3,128,128], index: 1, kind: input, shape index: {}]   ;;  %s761_s2 = inlined_call_operand.vmem [shape: f32[3,128], index: 2, kind: input, shape index: {}]   ;;  %s762_s3 = inlined_call_operand.hbm [shape: f32[8,128], index: 3, kind: output, shape index: {}]  }
   0x1   :  { %9 = vsyncpa [#allocation7], 0 }
   0x2   :  { %10 = vsyncpa [#allocation5], 0  ;;  %s650_s12 = smov [#allocation3]   ;;  %s651_s14 = smov [#allocation6]  }
   0x3   :  { %s17_s13 = sshll.u32 %s650_s12, 4  ;;  %s26_s15 = sshll.u32 %s651_s14, 4  ;;  %s18_s13 = int_to_ptr.vmem [resolvable:$true] %s17_s13  ;;  %s677_s15 = int_to_ptr.vmem [resolvable:$true] %s26_s15 }
   0x4   :  { %s578_s18 = scalar_lea.hbm %s759_s0, 128 }
   0x5   :  { %p579_p0 = scmp.ne.s32.totalorder %s759_s0, %s578_s18  ;;  %p582_p1 = scmp.lt.u32.totalorder %s578_s18, %s759_s0 }
   0x7   :  { %p584_p2 = pnand %p582_p1, %p579_p0 }
   0x9   :  { %587 = shalt.err (!%p584_p2)
}
   0xa   :  { %s588_s23 = scalar_lea.vmem %s18_s13, 128  ;;  %p593_p4 = scmp.lt.s32.totalorder %s18_s13, %s18_s13 }
   0xb   :  { %p589_p3 = scmp.ne.s32.totalorder %s18_s13, %s588_s23  ;;  %p594_p5 = scmp.lt.s32.totalorder %s588_s23, %s588_s23 }
   0xd   :  { %p595_p6 = por %p594_p5, %p593_p4 }
   0xf   :  { %p596_p7 = pnand %p595_p6, %p589_p3 }
  0x11   :  { %599 = shalt.err (!%p596_p7)
}
  0x12   :  { %20 = dma.hbm_to_vmem [thread:$0]  %s759_s0, 128, %s18_s13, [#allocation4]  }
  0x13   :  { %s600_s28 = scalar_lea.hbm %s760_s1, 3072 }
  0x14   :  { %p601_p8 = scmp.ne.s32.totalorder %s760_s1, %s600_s28  ;;  %p604_p9 = scmp.lt.u32.totalorder %s600_s28, %s760_s1 }
  0x16   :  { %p606_p10 = pnand %p604_p9, %p601_p8 }
  0x18   :  { %609 = shalt.err (!%p606_p10)
}
  0x19   :  { %s610_s6 = scalar_lea.vmem %s677_s15, 3072  ;;  %p615_p12 = scmp.lt.s32.totalorder %s677_s15, %s677_s15 }
  0x1a   :  { %p611_p11 = scmp.ne.s32.totalorder %s677_s15, %s610_s6  ;;  %p616_p13 = scmp.lt.s32.totalorder %s610_s6, %s610_s6 }
  0x1c   :  { %p617_p0 = por %p616_p13, %p615_p12 }
  0x1e   :  { %p618_p1 = pnand %p617_p0, %p611_p11 }
  0x20   :  { %621 = shalt.err (!%p618_p1)
}
  0x21   :  { %s652_s0 = smov 64   ;;  %s653_s7 = smov 4  }
  0x22   :  { %32 = dma.hbm_to_vmem [thread:$0]  %s760_s1, 3072, %s677_s15, [#allocation7], %s652_s0, %s652_s0, %s653_s7  }
  0x23   :  { %644 = dma.done.wait [#allocation4], 128  }
  0x24   :  { %645 = vsyncadd [#allocation4], 4294967168 }
  0x25   :  { %646 = dma.done.wait [#allocation7], 3072  }
  0x26   :  { %647 = vsyncadd [#allocation7], 4294964224  ;;  %v654_v0 = vmov 0.0   ;;  %vm655_vm0 = vmmov 0   ;;  %v548_v1 = vld [vmem:[#allocation6] sm:$0xff]   ;;  %v549_v2 = vld [vmem:[#allocation6 + $0x8] sm:$0xff]  }
  0x27   :  { %481 = vmatprep.subr.bf16.mxu0 %v654_v0  ;;  %497 = vmatprep.mubr.msk.bf16.mxu0 %vm655_vm0, %v654_v0  ;;  %v550_v3 = vld [vmem:[#allocation6 + $0x10] sm:$0xff]   ;;  %v551_v4 = vld [vmem:[#allocation6 + $0x18] sm:$0xff]   ;;  %v556_v5 = vld [vmem:[#allocation6 + $0x40] sm:$0xff]   ;;  %s656_s15 = smov [#allocation8]  }
  0x28   :  { %501 = vmatprep.subr.bf16.mxu1 %v654_v0  ;;  %517 = vmatprep.mubr.msk.bf16.mxu1 %vm655_vm0, %v654_v0  ;;  %v552_v6 = vld [vmem:[#allocation6 + $0x20] sm:$0xff]   ;;  %v553_v7 = vld [vmem:[#allocation6 + $0x28] sm:$0xff]   ;;  %v554_v8 = vld [vmem:[#allocation6 + $0x30] sm:$0xff]   ;;  %s417_s16 = sshll.u32 %s656_s15, 4  ;;  %s418_s16 = int_to_ptr.vmem [resolvable:$true] %s417_s16 }
  0x29   :  { %482 = vmatpush3.bf16.msra.mxu0 %v548_v1  ;;  %502 = vmatpush3.bf16.msra.mxu1 %v556_v5  ;;  %v555_v9 = vld [vmem:[#allocation6 + $0x38] sm:$0xff]   ;;  %v557_v12 = vld [vmem:[#allocation6 + $0x48] sm:$0xff]   ;;  %v558_v13 = vld [vmem:[#allocation6 + $0x50] sm:$0xff]   ;;  %p627_p3 = scmp.lt.s32.totalorder %s418_s16, %s418_s16 }
  0x2a   :  { %483 = vmatprep.subr.bf16.mxu0 %v654_v0  ;;  %503 = vmatprep.subr.bf16.mxu1 %v654_v0  ;;  %v42_v10 = vld [vmem:[#allocation3] sm:$0xff]  ;;  %v560_v15 = vld [vmem:[#allocation6 + $0x60] sm:$0xff]   ;;  %v561_v16 = vld [vmem:[#allocation6 + $0x68] sm:$0xff]  }
  0x2b   :  { %v45_v11 = vpack.c.bf16 %v42_v10, %v42_v10  ;;  %v559_v14 = vld [vmem:[#allocation6 + $0x58] sm:$0xff]   ;;  %v562_v17 = vld [vmem:[#allocation6 + $0x70] sm:$0xff]   ;;  %v564_v19 = vld [vmem:[#allocation6 + $0x80] sm:$0xff]  }
  0x2c   :  { %v563_v18 = vld [vmem:[#allocation6 + $0x78] sm:$0xff]   ;;  %v565_v36 = vld [vmem:[#allocation6 + $0x88] sm:$0xff]   ;;  %v566_v37 = vld [vmem:[#allocation6 + $0x90] sm:$0xff]  }
  0x2d   :  { %484 = vmatpush3.bf16.msra.mxu0 %v549_v2  ;;  %504 = vmatpush3.bf16.msra.mxu1 %v557_v12  ;;  %v427_v20 = vld [vmem:[%s761_s2] ss:$0 sm:$0xff]  ;;  %v568_v39 = vld [vmem:[#allocation6 + $0xa0] sm:$0xff]   ;;  %v569_v40 = vld [vmem:[#allocation6 + $0xa8] sm:$0xff]  }
  0x2e   :  { %485 = vmatprep.subr.bf16.mxu0 %v654_v0  ;;  %505 = vmatprep.subr.bf16.mxu1 %v654_v0  ;;  %v567_v38 = vld [vmem:[#allocation6 + $0x98] sm:$0xff]   ;;  %v570_v41 = vld [vmem:[#allocation6 + $0xb0] sm:$0xff]  }
  0x2f   :  { %v571_v42 = vld [vmem:[#allocation6 + $0xb8] sm:$0xff]  }
  0x30   :  { %v436_v43 = vld [vmem:[%s761_s2 + $0x1] ss:$0 sm:$0xff]  ;;  %v445_v59 = vld [vmem:[%s761_s2 + $0x2] ss:$0 sm:$0xff]  ;;  %s622_s2 = scalar_lea.vmem %s418_s16, 128 }
  0x31   :  { %486 = vmatpush3.bf16.msra.mxu0 %v550_v3  ;;  %506 = vmatpush3.bf16.msra.mxu1 %v558_v13  ;;  %p623_p2 = scmp.ne.s32.totalorder %s418_s16, %s622_s2  ;;  %p628_p4 = scmp.lt.s32.totalorder %s622_s2, %s622_s2 }
  0x32   :  { %487 = vmatprep.subr.bf16.mxu0 %v654_v0  ;;  %507 = vmatprep.subr.bf16.mxu1 %v654_v0 }
  0x33   :  { %p629_p5 = por %p628_p4, %p627_p3 }
  0x35   :  { %488 = vmatpush3.bf16.msra.mxu0 %v551_v4  ;;  %508 = vmatpush3.bf16.msra.mxu1 %v559_v14  ;;  %p630_p6 = pnand %p629_p5, %p623_p2 }
  0x36   :  { %489 = vmatprep.subr.bf16.mxu0 %v654_v0  ;;  %509 = vmatprep.subr.bf16.mxu1 %v654_v0 }
  0x39   :  { %490 = vmatpush3.bf16.msra.mxu0 %v552_v6  ;;  %510 = vmatpush3.bf16.msra.mxu1 %v560_v15 }
  0x3a   :  { %491 = vmatprep.subr.bf16.mxu0 %v654_v0  ;;  %511 = vmatprep.subr.bf16.mxu1 %v654_v0 }
  0x3d   :  { %492 = vmatpush3.bf16.msra.mxu0 %v553_v7  ;;  %512 = vmatpush3.bf16.msra.mxu1 %v561_v16 }
  0x3e   :  { %493 = vmatprep.subr.bf16.mxu0 %v654_v0  ;;  %513 = vmatprep.subr.bf16.mxu1 %v654_v0 }
  0x41   :  { %494 = vmatpush3.bf16.msra.mxu0 %v554_v8  ;;  %514 = vmatpush3.bf16.msra.mxu1 %v562_v17 }
  0x42   :  { %495 = vmatprep.subr.bf16.mxu0 %v654_v0  ;;  %515 = vmatprep.subr.bf16.mxu1 %v654_v0 }
  0x45   :  { %496 = vmatpush3.bf16.msra.mxu0 %v555_v9  ;;  %516 = vmatpush3.bf16.msra.mxu1 %v563_v18 }
  0x46   :  { %521 = vmatprep.subr.bf16.mxu0 %v654_v0 }
  0x48   :  { %498 = vmatmul.mubr.bf16.vlgmr.msra.gmra.mrb[0].mxu0 %v45_v11 }
  0x49   :  { %537 = vmatprep.mubr.msk.bf16.mxu0 %vm655_vm0, %v654_v0  ;;  %522 = vmatpush3.bf16.msra.mxu0 %v564_v19 }
  0x4a   :  { %523 = vmatprep.subr.bf16.mxu0 %v654_v0 }
  0x4d   :  { %524 = vmatpush3.bf16.msra.mxu0 %v565_v36 }
  0x4e   :  { %525 = vmatprep.subr.bf16.mxu0 %v654_v0 }
  0x51   :  { %526 = vmatpush3.bf16.msra.mxu0 %v566_v37 }
  0x52   :  { %527 = vmatprep.subr.bf16.mxu0 %v654_v0 }
  0x55   :  { %528 = vmatpush3.bf16.msra.mxu0 %v567_v38 }
  0x56   :  { %529 = vmatprep.subr.bf16.mxu0 %v654_v0 }
  0x59   :  { %530 = vmatpush3.bf16.msra.mxu0 %v568_v39 }
  0x5a   :  { %531 = vmatprep.subr.bf16.mxu0 %v654_v0 }
  0x5d   :  { %532 = vmatpush3.bf16.msra.mxu0 %v569_v40 }
  0x5e   :  { %533 = vmatprep.subr.bf16.mxu0 %v654_v0 }
  0x61   :  { %534 = vmatpush3.bf16.msra.mxu0 %v570_v41 }
  0x62   :  { %535 = vmatprep.subr.bf16.mxu0 %v654_v0 }
  0x65   :  { %536 = vmatpush3.bf16.msra.mxu0 %v571_v42 }
 0x11b   :  { %v149_v21 = vpop.f32.mrb[0].mxu0 }
 0x11c   :  { %v150_v22 = vadd.f32 %v427_v20, %v149_v21  ;;  %v499_v23 = vpop.f32.mrb[1].mxu0 }
 0x11d   :  { %v152_v24 = vpop.f32.mrb[2].mxu0 }
 0x11e   :  { %v155_v25 = vmul.f32 %v150_v22, %v150_v22  ;;  %v500_v26 = vpop.f32.mrb[3].mxu0  ;;  %v159_v32 = vmul.f32 0.5, %v150_v22 }
 0x120   :  { %v156_v27 = vmul.f32 %v155_v25, %v150_v22 }
 0x122   :  { %v157_v28 = vmul.f32 0.044715, %v156_v27 }
 0x124   :  { %v158_v29 = vadd.f32 %v157_v28, %v150_v22 }
 0x126   :  { %v160_v30 = vmul.f32 0.7978846, %v158_v29 }
 0x128   :  { %572 = vtanh.f32 %v160_v30 }
 0x132   :  { %v573_v31 = vpop.eup %572 }
 0x133   :  { %v162_v33 = vadd.f32 1.0, %v573_v31 }
 0x135   :  { %v163_v34 = vmul.f32 %v162_v33, %v159_v32 }
 0x137   :  { %v166_v35 = vpack.c.bf16 %v163_v34, %v163_v34 }
 0x139   :  { %518 = vmatmul.mubr.bf16.vlgmr.msra.gmra.mrb[0].mxu1 %v166_v35 }
 0x20c   :  { %v271_v44 = vpop.f32.mrb[0].mxu1 }
 0x20d   :  { %v272_v45 = vadd.f32 %v436_v43, %v271_v44  ;;  %v519_v46 = vpop.f32.mrb[1].mxu1 }
 0x20e   :  { %v274_v47 = vpop.f32.mrb[2].mxu1 }
 0x20f   :  { %v277_v48 = vmul.f32 %v272_v45, %v272_v45  ;;  %v520_v49 = vpop.f32.mrb[3].mxu1  ;;  %v281_v55 = vmul.f32 0.5, %v272_v45 }
 0x211   :  { %v278_v50 = vmul.f32 %v277_v48, %v272_v45 }
 0x213   :  { %v279_v51 = vmul.f32 0.044715, %v278_v50 }
 0x215   :  { %v280_v52 = vadd.f32 %v279_v51, %v272_v45 }
 0x217   :  { %v282_v53 = vmul.f32 0.7978846, %v280_v52 }
 0x219   :  { %574 = vtanh.f32 %v282_v53 }
 0x223   :  { %v575_v54 = vpop.eup %574 }
 0x224   :  { %v284_v56 = vadd.f32 1.0, %v575_v54 }
 0x226   :  { %v285_v57 = vmul.f32 %v284_v56, %v281_v55 }
 0x228   :  { %v288_v58 = vpack.c.bf16 %v285_v57, %v285_v57 }
 0x22a   :  { %538 = vmatmul.mubr.bf16.vlgmr.msra.gmra.mrb[4].mxu0 %v288_v58 }
 0x2fd   :  { %v393_v60 = vpop.f32.mrb[4].mxu0 }
 0x2fe   :  { %v394_v61 = vadd.f32 %v445_v59, %v393_v60  ;;  %v539_v62 = vpop.f32.mrb[5].mxu0 }
 0x2ff   :  { %v396_v63 = vpop.f32.mrb[6].mxu0 }
 0x300   :  { %v399_v0 = vmul.f32 %v394_v61, %v394_v61  ;;  %v540_v1 = vpop.f32.mrb[7].mxu0  ;;  %v403_v7 = vmul.f32 0.5, %v394_v61 }
 0x302   :  { %v400_v2 = vmul.f32 %v399_v0, %v394_v61 }
 0x304   :  { %v401_v3 = vmul.f32 0.044715, %v400_v2 }
 0x306   :  { %v402_v4 = vadd.f32 %v401_v3, %v394_v61 }
 0x308   :  { %v404_v5 = vmul.f32 0.7978846, %v402_v4 }
 0x30a   :  { %576 = vtanh.f32 %v404_v5 }
 0x314   :  { %v577_v6 = vpop.eup %576 }
 0x315   :  { %v406_v8 = vadd.f32 1.0, %v577_v6 }
 0x317   :  { %v407_v9 = vmul.f32 %v406_v8, %v403_v7 }
 0x319   :  { %410 = vst [vmem:[#allocation8] sm:$0xff] %v407_v9 }
 0x31a   :  { %633 = shalt.err (!%p630_p6)
}
 0x31b   :  { %s634_s19 = scalar_lea.hbm %s762_s3, 128 }
 0x31c   :  { %p635_p7 = scmp.ne.s32.totalorder %s762_s3, %s634_s19  ;;  %p638_p8 = scmp.lt.u32.totalorder %s634_s19, %s762_s3 }
 0x31e   :  { %p640_p9 = pnand %p638_p8, %p635_p7 }
 0x320   :  { %643 = shalt.err (!%p640_p9)
}
 0x321   :  { %420 = dma.vmem_to_hbm [thread:$0]  %s418_s16, 128, %s762_s3, [#allocation5]  }
 0x322   :  { %648 = dma.done.wait [#allocation5], 128  }
 0x323   :  { %649 = vsyncadd [#allocation5], 4294967168 }
 0x324   :  { %424 = vsyncpa [#allocation4], 1 }
 0x325   :  { %425 = vsyncpa [#allocation7], 1 }
 0x326   :  { %426 = vsyncpa [#allocation5], 1 }

</bundles_post_ra>
